<compile_context>
chip_gen: v7x
topology: tpu7x:2x2x1
jax: 0.10.0
libtpu: 0.0.40
codegen_flags: <defaults>
</compile_context>

<pallas_src>
import functools

import jax
import jax.numpy as jnp
import numpy as np
from jax.experimental import pallas as pl
from jax.experimental.pallas import tpu as pltpu

LN_EPS = 1e-5  # torch.nn.LayerNorm default


def _layernorm(x, g, b):
    mu = jnp.mean(x, axis=-1, keepdims=True)
    var = jnp.mean((x - mu) ** 2, axis=-1, keepdims=True)
    return (x - mu) * jax.lax.rsqrt(var + LN_EPS) * g + b


# --------------------------------------------------------------------------
# mlp_in: Linear(lookback_len, dim*t) -> rearrange 'b v (t d) -> b (v t) d'
#         -> LayerNorm(dim), plus writing the broadcast mem_tokens rows so no
#         separate HBM concat pass is needed afterwards.
# --------------------------------------------------------------------------
def _mlp_in_kernel(x_ref, mem_ref, w_ref, b_ref, g_ref, beta_ref, o_ref, *, dim, m):
    x = x_ref[0]                                                     # (v, lookback) bf16
    y = jnp.dot(x, w_ref[...], preferred_element_type=jnp.float32)  # (v, dim*t) f32
    y = y + b_ref[...]
    y = y.reshape(-1, dim)                                           # (v*t, dim)
    y = _layernorm(y, g_ref[...], beta_ref[...])
    # TODO(synk): assumes num_mem_tokens > 0 (module default is 4).
    o_ref[0, :m, :] = mem_ref[...]                                   # broadcast mem tokens
    o_ref[0, m:, :] = y


def mlp_in(xv, mem, w_in, b_in, ln_g, ln_b, *, t, dim):
    b, v, lookback = xv.shape
    m = mem.shape[0]
    n_out = m + v * t
    kern = functools.partial(_mlp_in_kernel, dim=dim, m=m)
    return pl.pallas_call(
        kern,
        out_shape=jax.ShapeDtypeStruct((b, n_out, dim), jnp.float32),
        grid_spec=pltpu.PrefetchScalarGridSpec(
            num_scalar_prefetch=0,
            grid=(b,),
            in_specs=[
                pl.BlockSpec((1, v, lookback), lambda i: (i, 0, 0)),
                pl.BlockSpec((m, dim), lambda i: (0, 0)),
                pl.BlockSpec((lookback, dim * t), lambda i: (0, 0)),
                pl.BlockSpec((1, dim * t), lambda i: (0, 0)),
                pl.BlockSpec((1, dim), lambda i: (0, 0)),
                pl.BlockSpec((1, dim), lambda i: (0, 0)),
            ],
            out_specs=pl.BlockSpec((1, n_out, dim), lambda i: (i, 0, 0)),
        ),
        compiler_params=pltpu.CompilerParams(dimension_semantics=("parallel",)),
    )(xv, mem, w_in, b_in, ln_g, ln_b)


# --------------------------------------------------------------------------
# One transformer layer (fully fused, grid over batch):
#   x = Attention(x) + x ; x = LayerNorm(x) ; x = FeedForward(x) + x ; x = LayerNorm(x)
# --------------------------------------------------------------------------
def _layer_kernel(x_ref, wqkvg_ref, wo_ref, ln1g_ref, ln1b_ref,
                  w1_ref, b1_ref, w2_ref, b2_ref, ln2g_ref, ln2b_ref,
                  o_ref, *, heads, dim_head, ff_pad):
    x = x_ref[0]                                                     # (n, dim) f32
    di = heads * dim_head
    xb = x.astype(jnp.bfloat16)

    # fused q/k/v/gate projection (scale already folded into the q columns)
    qkvg = jnp.dot(xb, wqkvg_ref[...], preferred_element_type=jnp.float32)
    q = qkvg[:, :di].astype(jnp.bfloat16)
    k = qkvg[:, di:2 * di].astype(jnp.bfloat16)
    v = qkvg[:, 2 * di:3 * di].astype(jnp.bfloat16)
    gates = jax.nn.sigmoid(qkvg[:, 3 * di:])                         # (n, heads) f32

    # per-head attention, accumulated straight through the wo row-slice
    acc = jnp.zeros(x.shape, jnp.float32)                            # (n, dim)
    for h in range(heads):                                           # static unrolled
        sl = slice(h * dim_head, (h + 1) * dim_head)
        s = jnp.dot(q[:, sl], k[:, sl].T, preferred_element_type=jnp.float32)
        s = s - jnp.max(s, axis=-1, keepdims=True)
        e = jnp.exp(s)
        p = e * pl.reciprocal(jnp.sum(e, axis=-1, keepdims=True), approx=True)
        oh = jnp.dot(p.astype(jnp.bfloat16), v[:, sl],
                     preferred_element_type=jnp.float32)             # (n, dh)
        oh = oh * gates[:, h:h + 1]
        acc = acc + jnp.dot(oh.astype(jnp.bfloat16), wo_ref[sl, :],
                            preferred_element_type=jnp.float32)      # (n, dim)

    x1 = _layernorm(x + acc, ln1g_ref[...], ln1b_ref[...])

    # FeedForward: fused Linear(dim, 2*ff_pad) -> GEGLU -> Linear(ff_pad, dim)
    ag = jnp.dot(x1.astype(jnp.bfloat16), w1_ref[...],
                 preferred_element_type=jnp.float32) + b1_ref[...]
    a = ag[:, :ff_pad]
    g = ag[:, ff_pad:]
    ff = a * jax.nn.gelu(g, approximate=False)       # exact GELU like F.gelu default
    y = jnp.dot(ff.astype(jnp.bfloat16), w2_ref[...],
                preferred_element_type=jnp.float32) + b2_ref[...]

    o_ref[0] = _layernorm(x1 + y, ln2g_ref[...], ln2b_ref[...])


def layer_forward(x, lp, *, heads, dim_head, ff_pad):
    b, n, dim = x.shape
    dim_inner = heads * dim_head
    qkvg_w = 3 * dim_inner + heads
    kern = functools.partial(_layer_kernel, heads=heads, dim_head=dim_head,
                             ff_pad=ff_pad)

    def full(shp):
        return pl.BlockSpec(shp, lambda i, nd=len(shp): (0,) * nd)

    # TODO(synk): for large realistic dims consider a (batch, query-tile) grid and
    # single-buffered weight specs (pl.Buffered(1)) plus an explicit vmem_limit_bytes;
    # at these shapes the defaults are sufficient.
    return pl.pallas_call(
        kern,
        out_shape=jax.ShapeDtypeStruct((b, n, dim), jnp.float32),
        grid_spec=pltpu.PrefetchScalarGridSpec(
            num_scalar_prefetch=0,
            grid=(b,),
            in_specs=[
                pl.BlockSpec((1, n, dim), lambda i: (i, 0, 0)),
                full((dim, qkvg_w)),
                full((dim_inner, dim)),
                full((1, dim)), full((1, dim)),
                full((dim, 2 * ff_pad)), full((1, 2 * ff_pad)),
                full((ff_pad, dim)), full((1, dim)),
                full((1, dim)), full((1, dim)),
            ],
            out_specs=pl.BlockSpec((1, n, dim), lambda i: (i, 0, 0)),
        ),
        compiler_params=pltpu.CompilerParams(dimension_semantics=("parallel",)),
    )(x, lp["wqkvg"], lp["wo"], lp["ln1_g"], lp["ln1_b"],
      lp["w1"], lp["b1"], lp["w2"], lp["b2"], lp["ln2_g"], lp["ln2_b"])


# --------------------------------------------------------------------------
# Full iTransformer_block forward (kernel path)
# --------------------------------------------------------------------------
def itransformer_block_forward(x, kparams, *, heads, dim_head, t, ff_pad):
    # TODO(synk): RevIN branch disabled (use_reversible_instance_norm=False default);
    # dropout layers are p=0.0 no-ops; pred_heads are never used in forward.
    dim = kparams["mem_tokens"].shape[1]
    m = kparams["mem_tokens"].shape[0]
    # 'b n v -> b v n' once, fused with the bf16 cast (halves input HBM traffic)
    xv = jnp.transpose(x, (0, 2, 1)).astype(jnp.bfloat16)
    seq = mlp_in(xv, kparams["mem_tokens"], kparams["w_in"], kparams["b_in"],
                 kparams["ln_in_g"], kparams["ln_in_b"], t=t, dim=dim)
    for lp in kparams["layers"]:
        seq = layer_forward(seq, lp, heads=heads, dim_head=dim_head, ff_pad=ff_pad)
    return seq[:, m:, :]                                  # unpack: drop mem tokens


# --------------------------------------------------------------------------
# Pack / fuse / pad / cast the logical parameters into the kernel layout
# --------------------------------------------------------------------------
def pack_params(params, *, heads, dim_head, ff_pad):
    scale = dim_head ** -0.5
    bf = lambda a: a.astype(jnp.bfloat16)
    kp = {
        "mem_tokens": params["mem_tokens"],
        "w_in": bf(params["w_in"]),
        "b_in": params["b_in"],
        "ln_in_g": params["ln_in_g"],
        "ln_in_b": params["ln_in_b"],
        "layers": [],
    }
    for lp in params["layers"]:
        ff_inner = lp["w1a"].shape[1]
        pad = ff_pad - ff_inner
        w1a = jnp.pad(lp["w1a"], ((0, 0), (0, pad)))
        w1b = jnp.pad(lp["w1b"], ((0, 0), (0, pad)))
        b1a = jnp.pad(lp["b1a"], ((0, 0), (0, pad)))
        b1b = jnp.pad(lp["b1b"], ((0, 0), (0, pad)))
        w2 = jnp.pad(lp["w2"], ((0, pad), (0, 0)))
        kp["layers"].append({
            # scale folded into the q columns; q/k/v/gates in one matmul
            "wqkvg": bf(jnp.concatenate(
                [lp["wq"] * scale, lp["wk"], lp["wv"], lp["wg"]], axis=1)),
            "wo": bf(lp["wo"]),
            "ln1_g": lp["ln1_g"], "ln1_b": lp["ln1_b"],
            "w1": bf(jnp.concatenate([w1a, w1b], axis=1)),
            "b1": jnp.concatenate([b1a, b1b], axis=1),
            "w2": bf(w2),
            "b2": lp["b2"],
            "ln2_g": lp["ln2_g"], "ln2_b": lp["ln2_b"],
        })
    return kp


# --------------------------------------------------------------------------
# Plain-JAX f32 reference (same math, no Pallas) for correctness checking
# --------------------------------------------------------------------------
def ref_forward(x, params, *, heads, dim_head, t):
    dim = params["mem_tokens"].shape[1]
    m = params["mem_tokens"].shape[0]
    b = x.shape[0]
    xv = jnp.transpose(x, (0, 2, 1))
    y = jnp.einsum("bvl,lo->bvo", xv, params["w_in"]) + params["b_in"][0]
    y = y.reshape(b, -1, dim)
    y = _layernorm(y, params["ln_in_g"][0], params["ln_in_b"][0])
    seq = jnp.concatenate(
        [jnp.broadcast_to(params["mem_tokens"][None], (b, m, dim)), y], axis=1)
    for lp in params["layers"]:
        xs = seq
        n = xs.shape[1]
        q, k, v = xs @ lp["wq"], xs @ lp["wk"], xs @ lp["wv"]
        sh = lambda z: z.reshape(b, n, heads, dim_head).transpose(0, 2, 1, 3)
        qh, kh, vh = sh(q), sh(k), sh(v)
        s = jnp.einsum("bhnd,bhmd->bhnm", qh, kh) * (dim_head ** -0.5)
        p = jax.nn.softmax(s, axis=-1)
        o = jnp.einsum("bhnm,bhmd->bhnd", p, vh)
        gates = jax.nn.sigmoid(xs @ lp["wg"])             # (b, n, h)
        o = o * gates.transpose(0, 2, 1)[..., None]
        o = o.transpose(0, 2, 1, 3).reshape(b, n, heads * dim_head) @ lp["wo"]
        xs = _layernorm(xs + o, lp["ln1_g"][0], lp["ln1_b"][0])
        a = xs @ lp["w1a"] + lp["b1a"][0]
        g = xs @ lp["w1b"] + lp["b1b"][0]
        ff = (a * jax.nn.gelu(g, approximate=False)) @ lp["w2"] + lp["b2"][0]
        seq = _layernorm(xs + ff, lp["ln2_g"][0], lp["ln2_b"][0])
    return seq[:, m:, :]


# --------------------------------------------------------------------------
# Deterministic synthetic parameter init (shapes from the module __init__)
# --------------------------------------------------------------------------
def init_params(key, *, lookback_len, depth, dim, heads, dim_head, ff_mult,
                num_mem_tokens, t):
    dim_inner = heads * dim_head
    ff_inner = int(dim * ff_mult * 2 / 3)
    keys = iter(jax.random.split(key, 8 + depth * 16))
    nrm = lambda shp, s=0.02: jax.random.normal(next(keys), shp, jnp.float32) * s

    params = {
        "mem_tokens": jax.random.normal(next(keys), (num_mem_tokens, dim), jnp.float32),
        "w_in": nrm((lookback_len, dim * t)),
        "b_in": nrm((1, dim * t)),
        "ln_in_g": jnp.ones((1, dim), jnp.float32),
        "ln_in_b": jnp.zeros((1, dim), jnp.float32),
        "layers": [],
    }
    for _ in range(depth):
        params["layers"].append({
            "wq": nrm((dim, dim_inner)),
            "wk": nrm((dim, dim_inner)),
            "wv": nrm((dim, dim_inner)),
            "wg": nrm((dim, heads)),
            "wo": nrm((dim_inner, dim)),
            "ln1_g": jnp.ones((1, dim), jnp.float32),
            "ln1_b": jnp.zeros((1, dim), jnp.float32),
            "w1a": nrm((dim, ff_inner)),   # first half of Linear(dim, 2*ff_inner) -> GEGLU value
            "w1b": nrm((dim, ff_inner)),   # second half -> GEGLU gate
            "b1a": nrm((1, ff_inner)),
            "b1b": nrm((1, ff_inner)),
            "w2": nrm((ff_inner, dim)),
            "b2": nrm((1, dim)),
            "ln2_g": jnp.ones((1, dim), jnp.float32),
            "ln2_b": jnp.zeros((1, dim), jnp.float32),
        })
    return params


if __name__ == "__main__":
    # small config consistent with the module's forward contract
    B, LOOKBACK, V = 2, 8, 4
    DIM, DEPTH, HEADS, DIM_HEAD = 32, 2, 4, 32
    NUM_MEM, T, FF_MULT = 4, 1, 4
    FF_INNER = int(DIM * FF_MULT * 2 / 3)
    FF_PAD = ((FF_INNER + 127) // 128) * 128        # lane-dense GEGLU split

    key = jax.random.PRNGKey(0)
    kx, kparam = jax.random.split(key)
    x = jax.random.normal(kx, (B, LOOKBACK, V), jnp.float32)  # (b, lookback_len, num_variates)
    params = init_params(kparam, lookback_len=LOOKBACK, depth=DEPTH, dim=DIM,
                         heads=HEADS, dim_head=DIM_HEAD, ff_mult=FF_MULT,
                         num_mem_tokens=NUM_MEM, t=T)
    kparams = pack_params(params, heads=HEADS, dim_head=DIM_HEAD, ff_pad=FF_PAD)

    out = itransformer_block_forward(x, kparams, heads=HEADS, dim_head=DIM_HEAD,
                                     t=T, ff_pad=FF_PAD)
    out = jax.block_until_ready(out)

    ref = ref_forward(x, params, heads=HEADS, dim_head=DIM_HEAD, t=T)
    assert out.shape == (B, V * T, DIM), out.shape
    # bf16 matmul operands + approx reciprocal -> looser tolerance vs the f32 reference
    np.testing.assert_allclose(np.asarray(out), np.asarray(ref), rtol=2e-2, atol=2e-2)
    print("KERNEL_OK")
</pallas_src>

<mosaic_0001>
module attributes {stable_mosaic.version = 11 : i64} {
  func.func @_mlp_in_kernel(%arg0: i32, %arg1: memref<1x4x8xbf16, #tpu.memory_space<vmem>>, %arg2: memref<4x32xf32, #tpu.memory_space<vmem>>, %arg3: memref<8x32xbf16, #tpu.memory_space<vmem>>, %arg4: memref<1x32xf32, #tpu.memory_space<vmem>>, %arg5: memref<1x32xf32, #tpu.memory_space<vmem>>, %arg6: memref<1x32xf32, #tpu.memory_space<vmem>>, %arg7: memref<1x8x32xf32, #tpu.memory_space<vmem>>) attributes {dimension_semantics = [#tpu.dimension_semantics<parallel>], iteration_bounds = array<i64: 2>, scalar_prefetch = 0 : i64, scratch_operands = 0 : i64, tpu.core_type = #tpu.core_type<tc>, window_params = [{transform_indices = @transform_0, window_bounds = array<i64: 1, 4, 8>}, {pipeline_mode = #tpu.pipeline_mode<synchronous>, transform_indices = @transform_1, window_bounds = array<i64: 4, 32>}, {pipeline_mode = #tpu.pipeline_mode<synchronous>, transform_indices = @transform_2, window_bounds = array<i64: 8, 32>}, {pipeline_mode = #tpu.pipeline_mode<synchronous>, transform_indices = @transform_3, window_bounds = array<i64: 1, 32>}, {pipeline_mode = #tpu.pipeline_mode<synchronous>, transform_indices = @transform_4, window_bounds = array<i64: 1, 32>}, {pipeline_mode = #tpu.pipeline_mode<synchronous>, transform_indices = @transform_5, window_bounds = array<i64: 1, 32>}, {transform_indices = @transform_6, window_bounds = array<i64: 1, 8, 32>}]} {
    %c0 = arith.constant 0 : index
    %c0_0 = arith.constant 0 : index
    %c0_1 = arith.constant 0 : index
    %0 = vector.load %arg1[%c0, %c0_0, %c0_1] : memref<1x4x8xbf16, #tpu.memory_space<vmem>>, vector<1x4x8xbf16>
    %1 = vector.shape_cast %0 : vector<1x4x8xbf16> to vector<4x8xbf16>
    %c0_2 = arith.constant 0 : index
    %c0_3 = arith.constant 0 : index
    %2 = vector.load %arg3[%c0_2, %c0_3] : memref<8x32xbf16, #tpu.memory_space<vmem>>, vector<8x32xbf16>
    %cst = arith.constant dense<0.000000e+00> : vector<4x32xf32>
    %3 = tpu.matmul %1, %2, %cst {dimension_numbers = #tpu.dot_dimension_numbers<[1], [0], [0], [1], [0, 0, 1, 1], [], []>} : vector<4x8xbf16>, vector<8x32xbf16>, vector<4x32xf32> -> vector<4x32xf32>
    %c0_4 = arith.constant 0 : index
    %c0_5 = arith.constant 0 : index
    %4 = vector.load %arg4[%c0_4, %c0_5] : memref<1x32xf32, #tpu.memory_space<vmem>>, vector<1x32xf32>
    %5 = vector.broadcast %4 : vector<1x32xf32> to vector<4x32xf32>
    %6 = arith.addf %3, %5 : vector<4x32xf32>
    %c0_6 = arith.constant 0 : index
    %c0_7 = arith.constant 0 : index
    %7 = vector.load %arg5[%c0_6, %c0_7] : memref<1x32xf32, #tpu.memory_space<vmem>>, vector<1x32xf32>
    %c0_8 = arith.constant 0 : index
    %c0_9 = arith.constant 0 : index
    %8 = vector.load %arg6[%c0_8, %c0_9] : memref<1x32xf32, #tpu.memory_space<vmem>>, vector<1x32xf32>
    %cst_10 = arith.constant dense<0.000000e+00> : vector<4xf32>
    %9 = vector.multi_reduction <add>, %6, %cst_10 [1] : vector<4x32xf32> to vector<4xf32>
    %10 = vector.shape_cast %9 : vector<4xf32> to vector<4x1xf32>
    %cst_11 = arith.constant 3.200000e+01 : f32
    %11 = vector.broadcast %cst_11 : f32 to vector<4x1xf32>
    %12 = arith.divf %10, %11 : vector<4x1xf32>
    %13 = vector.broadcast %12 : vector<4x1xf32> to vector<4x32xf32>
    %14 = arith.subf %6, %13 : vector<4x32xf32>
    %15 = arith.mulf %14, %14 : vector<4x32xf32>
    %cst_12 = arith.constant dense<0.000000e+00> : vector<4xf32>
    %16 = vector.multi_reduction <add>, %15, %cst_12 [1] : vector<4x32xf32> to vector<4xf32>
    %17 = vector.shape_cast %16 : vector<4xf32> to vector<4x1xf32>
    %cst_13 = arith.constant 3.200000e+01 : f32
    %18 = vector.broadcast %cst_13 : f32 to vector<4x1xf32>
    %19 = arith.divf %17, %18 : vector<4x1xf32>
    %20 = vector.broadcast %12 : vector<4x1xf32> to vector<4x32xf32>
    %21 = arith.subf %6, %20 : vector<4x32xf32>
    %cst_14 = arith.constant 9.99999974E-6 : f32
    %22 = vector.broadcast %cst_14 : f32 to vector<4x1xf32>
    %23 = arith.addf %19, %22 : vector<4x1xf32>
    %24 = math.rsqrt %23 : vector<4x1xf32>
    %25 = vector.broadcast %24 : vector<4x1xf32> to vector<4x32xf32>
    %26 = arith.mulf %21, %25 : vector<4x32xf32>
    %27 = vector.broadcast %7 : vector<1x32xf32> to vector<4x32xf32>
    %28 = arith.mulf %26, %27 : vector<4x32xf32>
    %29 = vector.broadcast %8 : vector<1x32xf32> to vector<4x32xf32>
    %30 = arith.addf %28, %29 : vector<4x32xf32>
    %c0_15 = arith.constant 0 : index
    %c0_16 = arith.constant 0 : index
    %31 = vector.load %arg2[%c0_15, %c0_16] : memref<4x32xf32, #tpu.memory_space<vmem>>, vector<4x32xf32>
    %c0_17 = arith.constant 0 : index
    %c0_18 = arith.constant 0 : index
    %c0_19 = arith.constant 0 : index
    %32 = vector.load %arg7[%c0_17, %c0_18, %c0_19] : memref<1x8x32xf32, #tpu.memory_space<vmem>>, vector<1x4x32xf32>
    %33 = vector.shape_cast %32 : vector<1x4x32xf32> to vector<4x32xf32>
    %34 = vector.shape_cast %31 : vector<4x32xf32> to vector<1x4x32xf32>
    tpu.vector_store %arg7[%c0_17, %c0_18, %c0_19], %34 {strides = array<i32>} : memref<1x8x32xf32, #tpu.memory_space<vmem>>, vector<1x4x32xf32>,
    %c0_20 = arith.constant 0 : index
    %c4 = arith.constant 4 : index
    %c0_21 = arith.constant 0 : index
    %35 = vector.load %arg7[%c0_20, %c4, %c0_21] : memref<1x8x32xf32, #tpu.memory_space<vmem>>, vector<1x4x32xf32>
    %36 = vector.shape_cast %35 : vector<1x4x32xf32> to vector<4x32xf32>
    %37 = vector.shape_cast %30 : vector<4x32xf32> to vector<1x4x32xf32>
    tpu.vector_store %arg7[%c0_20, %c4, %c0_21], %37 {strides = array<i32>} : memref<1x8x32xf32, #tpu.memory_space<vmem>>, vector<1x4x32xf32>,
    return
  }
  func.func @transform_0(%arg0: i32) -> (i32, i32, i32) {
    %c0_i32 = arith.constant 0 : i32
    %c0_i32_0 = arith.constant 0 : i32
    %c0_i32_1 = arith.constant 0 : i32
    return %arg0, %c0_i32, %c0_i32_0 : i32, i32, i32
  }
  func.func @transform_1(%arg0: i32) -> (i32, i32) {
    %c0_i32 = arith.constant 0 : i32
    %c0_i32_0 = arith.constant 0 : i32
    %c0_i32_1 = arith.constant 0 : i32
    return %c0_i32, %c0_i32_0 : i32, i32
  }
  func.func @transform_2(%arg0: i32) -> (i32, i32) {
    %c0_i32 = arith.constant 0 : i32
    %c0_i32_0 = arith.constant 0 : i32
    %c0_i32_1 = arith.constant 0 : i32
    return %c0_i32, %c0_i32_0 : i32, i32
  }
  func.func @transform_3(%arg0: i32) -> (i32, i32) {
    %c0_i32 = arith.constant 0 : i32
    %c0_i32_0 = arith.constant 0 : i32
    %c0_i32_1 = arith.constant 0 : i32
    return %c0_i32, %c0_i32_0 : i32, i32
  }
  func.func @transform_4(%arg0: i32) -> (i32, i32) {
    %c0_i32 = arith.constant 0 : i32
    %c0_i32_0 = arith.constant 0 : i32
    %c0_i32_1 = arith.constant 0 : i32
    return %c0_i32, %c0_i32_0 : i32, i32
  }
  func.func @transform_5(%arg0: i32) -> (i32, i32) {
    %c0_i32 = arith.constant 0 : i32
    %c0_i32_0 = arith.constant 0 : i32
    %c0_i32_1 = arith.constant 0 : i32
    return %c0_i32, %c0_i32_0 : i32, i32
  }
  func.func @transform_6(%arg0: i32) -> (i32, i32, i32) {
    %c0_i32 = arith.constant 0 : i32
    %c0_i32_0 = arith.constant 0 : i32
    %c0_i32_1 = arith.constant 0 : i32
    return %arg0, %c0_i32, %c0_i32_0 : i32, i32, i32
  }
}

</mosaic_0001>

<bundles_post_ra>
// kernel: tpu_custom_call.1
= control target key start
LH: loop header
LB: loop body
LE: loop exit
PB: predicated region body
PF: predicated region fallthrough
CT: control target
= control target key end

     0   :  { %11 = vsyncpa [#allocation3], 0  ;;  %s946_s0 = inlined_call_operand.hbm [shape: bf16[2,4,8], index: 0, kind: input, shape index: {}]   ;;  %s947_s1 = inlined_call_operand.hbm [shape: f32[4,32], index: 1, kind: input, shape index: {}]   ;;  %s948_s2 = inlined_call_operand.vmem [shape: bf16[8,32], index: 2, kind: input, shape index: {}]   ;;  %s949_s3 = inlined_call_operand.vmem [shape: f32[1,32], index: 3, kind: input, shape index: {}]   ;;  %s950_s4 = inlined_call_operand.vmem [shape: f32[1,32], index: 4, kind: input, shape index: {}]   ;;  %s951_s5 = inlined_call_operand.vmem [shape: f32[1,32], index: 5, kind: input, shape index: {}]   ;;  %s952_s6 = inlined_call_operand.hbm [shape: f32[2,8,32], index: 6, kind: output, shape index: {}]  }
   0x1   :  { %13 = vsyncpa [#allocation3 + $0x1], 0 }
   0x2   :  { %14 = vsyncpa [#allocation6], 0 }
   0x3   :  { %15 = vsyncpa [#allocation4], 0 }
   0x4   :  { %17 = vsyncpa [#allocation4 + $0x1], 0  ;;  %s723_s21 = smov 0   ;;  %s725_s22 = smov 0  }
   0x5   :  { %s727_s23 = smov 0   ;;  %s729_s24 = smov 0  }
   0x6 LB: > { %s744_s25 = sadd.s32 4294967295, %s681_s24   ;;  %s466_s26 = sadd.s32 4294967294, %s681_s24   ;;  %s681_s24 = sphi %s729_s24, %s976_s24   ;;  %s677_s23 = sphi %s727_s23, %s975_s23   ;;  %s673_s22 = sphi %s725_s22, %s974_s22   ;;  %s669_s21 = sphi %s723_s21, %s973_s21  }
   0x7   : > { %p43_p0 = scmp.ne.s32.totalorder %s673_s22, %s669_s21  ;;  %p953_p1 = scmp.eq.s32.totalorder %s744_s25, 0 }
   0x8   : > { %p178_p3 = scmp.eq.s32.totalorder %s466_s26, 1  ;;  %p467_p5 = scmp.ge.s32.totalorder %s681_s24, 1 }
   0x9   : > { %p753_p4 = por %p953_p1, %p43_p0  ;;  %p185_p7 = scmp.lt.s32.totalorder %s681_s24, 3 }
   0xa   : > { %p758_p6 = por %p178_p3, %p43_p0  ;;  %s683_s30 = smov [#allocation5]  }
   0xb   : > { %s956_s27 = scalar_select %p753_p4, 1, 0 }
   0xc   : > { %s957_s28 = scalar_select %p758_p6, 1, 0 }
   0xd   : > { %p763_p8 = pnand %p467_p5, %p185_p7  ;;  %s198_s7 = sshll.u32 %s683_s30, 4  ;;  %s199_s7 = int_to_ptr.vmem [resolvable:$true] %s198_s7 }
   0xe   : > { %s771_s8 = sadd.s32 1, %s681_s24   ;;  %s30_s12 = sadd.s32 1, %s677_s23 }
   0xf   : > { %s958_s29 = scalar_select %p763_p8, 1, 0 }
  0x10   : > { %p500_p10 = pneg %p763_p8  ;;  %s27_s10 = ssub.s32 %s681_s24, %s771_s8 }
  0x11   : > { %p781_p12 = scmp.eq.s32.totalorder %s27_s10, 0  ;;  %s553_s15 = scalar_lea.hbm %s947_s1, 64 }
  0x12   : > { %p775_p11 = pnand %p500_p10, %p953_p1  ;;  %p554_p0 = scmp.ne.s32.totalorder %s947_s1, %s553_s15 }
  0x13   : > { %s960_s11 = scalar_select %p781_p12, 1, 0 }
  0x14   : > { %p555_p3 = pneg %p775_p11  ;;  %p560_p10 = scmp.lt.u32.totalorder %s553_s15, %s947_s1 }
  0x16   : > { %p556_p5 = pnand %p555_p3, %p554_p0 }
  0x18   : > { %p557_p7 = pneg %p556_p5 }
  0x1a   : > { %p562_p9 = pnand %p560_p10, %p557_p7 }
  0x1c   : > { %565 = shalt.err (!%p562_p9)
}
  0x1d   : > { %s566_s20 = scalar_lea.vmem %s199_s7, 64  ;;  %p574_p6 = scmp.lt.s32.totalorder %s199_s7, %s199_s7 }
  0x1e   : > { %p567_p1 = scmp.ne.s32.totalorder %s199_s7, %s566_s20  ;;  %p575_p4 = scmp.lt.s32.totalorder %s566_s20, %s566_s20 }
  0x20   : > { %p569_p2 = pnand %p567_p1, %p555_p3  ;;  %p576_p8 = por %p575_p4, %p574_p6 }
  0x22   : > { %p570_p13 = pneg %p569_p2 }
  0x24   : > { %p577_p12 = pnand %p576_p8, %p570_p13 }
  0x26   : > { %580 = shalt.err (!%p577_p12)
}
  0x27   : > { %503 = dma.hbm_to_vmem [thread:$0]  (!%p775_p11), %s947_s1, 64, %s199_s7, [#allocation6]  }
  0x28   : > { %p961_p1 = scmp.ne.s32.totalorder %s960_s11, 0  ;;  %p38_p2 = scmp.eq.s32.totalorder %s681_s24, 0 }
  0x29   : > { %p962_p4 = scmp.ne.s32.totalorder %s677_s23, %s673_s22  ;;  %p963_p6 = scmp.eq.s32.totalorder %s744_s25, 1 }
  0x2a   : > { %s807_s10 = scalar_select %p961_p1, %s677_s23, %s30_s12  }
  0x2b   : > { %p815_p8 = por %p963_p6, %p962_p4  ;;  %p513_p9 = scmp.lt.s32.totalorder %s681_s24, 2 }
  0x2c   : > { %s221_s13 = sand.u32 1, %s677_s23   ;;  %p965_p12 = pmov %p962_p4 }
  0x2d   : > { %s470_s14 = sshll.u32 %s221_s13, 1  ;;  %s471_s15 = sshll.u32 %s681_s24, 5 }
  0x2e   : > { %p39_p13 = por %p38_p2, %p965_p12  ;;  %s828_s7 = scalar_lea.hbm %s946_s0, %s471_s15 }
  0x2f   : > { %s225_s11 = scalar_lea.vmem [#allocation2], %s470_s14  ;;  %s222_s19 = scalar_lea.sflag [#allocation3], %s221_s13 }
  0x30   : > { %s232_s12 = sshll.u32 %s225_s11, 4  ;;  %p830_p11 = pnand %p513_p9, %p39_p13  ;;  %s834_s12 = int_to_ptr.vmem [resolvable:$true] %s232_s12 }
  0x31   : > { %s581_s20 = scalar_lea.hbm %s828_s7, 32  ;;  %s586_s14 = scalar_lea.hbm %s946_s0, 64 }
  0x32   : > { %p582_p0 = scmp.ne.s32.totalorder %s828_s7, %s581_s20  ;;  %p583_p3 = pneg %p830_p11 }
  0x33   : > { %p587_p10 = scmp.lt.u32.totalorder %s828_s7, %s946_s0  ;;  %p588_p1 = scmp.lt.u32.totalorder %s586_s14, %s581_s20 }
  0x34   : > { %p584_p5 = pnand %p583_p3, %p582_p0  ;;  %p590_p4 = scmp.lt.u32.totalorder %s581_s20, %s828_s7 }
  0x35   : > { %p589_p2 = por %p588_p1, %p587_p10 }
  0x36   : > { %p585_p7 = pneg %p584_p5 }
  0x37   : > { %p591_p6 = por %p590_p4, %p589_p2 }
  0x39   : > { %p592_p9 = pnand %p591_p6, %p585_p7 }
  0x3b   : > { %595 = shalt.err (!%p592_p9)
}
  0x3c   : > { %s596_s13 = scalar_lea.vmem %s834_s12, 32  ;;  %s684_s17 = smov [#allocation2]  }
  0x3d   : > { %p597_p12 = scmp.ne.s32.totalorder %s834_s12, %s596_s13  ;;  %s601_s11 = sshll.u32 %s684_s17, 4  ;;  %s602_s11 = int_to_ptr.vmem [resolvable:$false] %s601_s11 }
  0x3e   : > { %s603_s26 = scalar_lea.vmem %s602_s11, 64  ;;  %p604_p5 = scmp.lt.s32.totalorder %s834_s12, %s602_s11 }
  0x3f   : > { %p599_p13 = pnand %p597_p12, %p583_p3  ;;  %p605_p10 = scmp.lt.s32.totalorder %s603_s26, %s596_s13 }
  0x41   : > { %p600_p0 = pneg %p599_p13  ;;  %p606_p1 = por %p605_p10, %p604_p5 }
  0x43   : > { %p607_p2 = pnand %p606_p1, %p600_p0 }
  0x45   : > { %610 = shalt.err (!%p607_p2)
}
  0x46   : > { %507 = dma.hbm_to_vmem [thread:$0]  (!%p830_p11), %s828_s7, 32, %s834_s12, %s222_s19  }
  0x47   : > { %p967_p7 = scmp.ne.s32.totalorder %s958_s29, 0 }
  0x48   : > { %s864_s20 = sand.u32 (!%p967_p7), 1, %s673_s22   ;;  %p968_p3 = scmp.ne.s32.totalorder (!%p967_p7), %s956_s27, 0 }
  0x49   : > { %241 = sbr.rel (%p967_p7) target bundleno = 630 (0x276), region = 44  ;;  %s473_s30 = sshll.u32 (!%p967_p7), %s864_s20, 1 }
  0x4a   : > { %s244_s14 = scalar_lea.sflag (!%p967_p7), [#allocation3], %s864_s20  ;;  %s247_s15 = scalar_lea.vmem (!%p967_p7), [#allocation2], %s473_s30 }
  0x50   : > { %656 = dma.done.wait (%p968_p3), %s244_s14, 32  }
  0x51   : > { %658 = vsyncadd (%p968_p3), %s244_s14, 4294967264  ;;  %p969_p4 = scmp.eq.s32.totalorder %s744_s25, 0 }
  0x53   : > { %660 = dma.done.wait (%p969_p4), [#allocation6], 64   ;;  %p970_p11 = pmov %p969_p4 }
  0x54   : > { %v685_v0 = vmov 0.0   ;;  %vm686_vm0 = vmmov 0   ;;  %vm294_vm1 = vcmask 1043456   ;;  %v282_v1 = vld [vmem:[%s948_s2] sm:$0xf]  ;;  %vm290_vm2 = vcmask 64512  }
  0x55   : > { %662 = vsyncadd (%p970_p11), [#allocation6], 4294967232  ;;  %486 = vmatprep.subr.bf16.mxu0 %v685_v0  ;;  %488 = vmatprep.mubr.msk.bf16.mxu0 %vm686_vm0, %v685_v0  ;;  %v296_v2 = vsel %vm294_vm1, %v282_v1, 0  ;;  %v281_v3 = vld [vmem:[%s247_s15] sm:$0x3]  ;;  %s475_s27 = sshll.u32 %s864_s20, 3 }
  0x56   : > { %487 = vmatpush3.bf16.msra.mxu0 %v296_v2  ;;  %v369_v4 = vld [vmem:[#allocation5] sm:$0xf]  ;;  %vm340_vm3 = vcmask 257024   ;;  %s880_s12 = scalar_lea.vmem [#allocation7], %s475_s27  ;;  %v476_v5 = vld [vmem:[%s949_s3] ss:$0 sm:$0xff] }
  0x57   : > { %370 = vst.msk [vmem:[%s880_s12] sm:$0xf] %vm340_vm3, %v369_v4  ;;  %v478_v21 = vld [vmem:[%s950_s4] ss:$0 sm:$0xff]  ;;  %s481_s26 = sshll.u32 %s744_s25, 7  ;;  %s386_s30 = sshll.u32 %s880_s12, 4  ;;  %s902_s30 = int_to_ptr.vmem [resolvable:$true] %s386_s30 }
  0x58   : > { %v479_v23 = vld [vmem:[%s951_s5] ss:$0 sm:$0xff]  ;;  %s900_s29 = scalar_lea.hbm %s952_s6, %s481_s26  ;;  %s373_s7 = scalar_lea.sflag [#allocation4], %s864_s20 }
  0x59   : > { %489 = vmatmul.mubr.msk.bf16.vlgmr.msra.gmra.mrb[0].mxu0 %vm290_vm2, %v281_v3  ;;  %s611_s27 = scalar_lea.vmem %s902_s30, 128  ;;  %s687_s25 = smov [#allocation7]  }
  0x5a   : > { %p612_p6 = scmp.ne.s32.totalorder %s902_s30, %s611_s27  ;;  %s615_s18 = sshll.u32 %s687_s25, 4  ;;  %s616_s18 = int_to_ptr.vmem [resolvable:$false] %s615_s18 }
  0x5b   : > { %s617_s19 = scalar_lea.vmem %s616_s18, 256  ;;  %p618_p13 = scmp.lt.s32.totalorder %s902_s30, %s616_s18 }
  0x5c   : > { %p613_p9 = pnand %p612_p6, %p815_p8  ;;  %p619_p0 = scmp.lt.s32.totalorder %s617_s19, %s611_s27 }
  0x5e   : > { %p614_p12 = pneg %p613_p9  ;;  %p620_p5 = por %p619_p0, %p618_p13 }
  0x60   : > { %p621_p10 = pnand %p620_p5, %p614_p12 }
 0x12c   : > { %v332_v6 = vpop.f32.mrb[0].mxu0 }
 0x12d   : > { %v333_v7 = vadd.f32 %v476_v5, %v332_v6  ;;  %v490_v8 = vpop.f32.mrb[1].mxu0 }
 0x12e   : > { %v335_v9 = vpop.f32.mrb[2].mxu0 }
 0x12f   : > { %v491_v10 = vpop.f32.mrb[3].mxu0  ;;  %v341_v11 = vsel %vm340_vm3, %v333_v7, 0.0 }
 0x130   : > { %342 = vadd.xlane.f32.xlu0 %v341_v11 }
 0x1bd   : > { %v343_v12 = vpop.xlane.xlu0 %342 }
 0x1be   : > { %v345_v13 = vmul.f32 0.03125, %v343_v12 }
 0x1c0   : > { %v346_v14 = vsub.f32 %v333_v7, %v345_v13 }
 0x1c2   : > { %v347_v15 = vmul.f32 %v346_v14, %v346_v14 }
 0x1c4   : > { %v348_v16 = vsel %vm340_vm3, %v347_v15, 0.0 }
 0x1c5   : > { %349 = vadd.xlane.f32.xlu0 %v348_v16 }
 0x252   : > { %v350_v17 = vpop.xlane.xlu0 %349 }
 0x253   : > { %v351_v18 = vmul.f32 0.03125, %v350_v17 }
 0x255   : > { %v352_v19 = vadd.f32 1e-05, %v351_v18 }
 0x257   : > { %551 = vrsqrt.f32 %v352_v19 }
 0x261   : > { %v552_v20 = vpop.eup %551 }
 0x262   : > { %v354_v22 = vmul.f32 %v552_v20, %v346_v14 }
 0x264   : > { %v361_v24 = vmul.f32 %v478_v21, %v354_v22 }
 0x266   : > { %v368_v25 = vadd.f32 %v479_v23, %v361_v24 }
 0x268   : > { %371 = vst.msk [vmem:[%s880_s12 + $0x4] sm:$0xf] %vm340_vm3, %v368_v25 }
 0x269   : > { %624 = shalt.err (!%p621_p10)
}
 0x26a   : > { %s625_s20 = scalar_lea.hbm %s900_s29, 128  ;;  %s629_s13 = scalar_lea.hbm %s952_s6, 256 }
 0x26b   : > { %p626_p1 = scmp.ne.s32.totalorder %s900_s29, %s625_s20  ;;  %p630_p3 = scmp.lt.u32.totalorder %s900_s29, %s952_s6 }
 0x26c   : > { %p631_p4 = scmp.lt.u32.totalorder %s629_s13, %s625_s20  ;;  %p633_p6 = scmp.lt.u32.totalorder %s625_s20, %s900_s29 }
 0x26d   : > { %p627_p2 = pnand %p626_p1, %p815_p8 }
 0x26e   : > { %p632_p11 = por %p631_p4, %p630_p3 }
 0x26f   : > { %p628_p7 = pneg %p627_p2 }
 0x270   : > { %p634_p9 = por %p633_p6, %p632_p11 }
 0x272   : > { %p635_p12 = pnand %p634_p9, %p628_p7 }
 0x274   : > { %638 = shalt.err (!%p635_p12)
}
 0x275   : > { %498 = dma.vmem_to_hbm [thread:$0]  (%p815_p8), %s902_s30, 128, %s900_s29, %s373_s7  }
 0x276 PF: > { %s398_s26 = sand.u32 1, %s669_s21   ;;  %p971_p13 = scmp.ne.s32.totalorder %s957_s28, 0 }
 0x277   : > { %p972_p0 = scmp.ge.s32.totalorder %s681_s24, 2  ;;  %s399_s14 = scalar_lea.sflag [#allocation4], %s398_s26 }
 0x279   : > { %p509_p5 = pnand %p972_p0, %p971_p13 }
 0x27b   : > { %664 = dma.done.wait (!%p509_p5), %s399_s14, 128  }
 0x27c   : > { %666 = vsyncadd (!%p509_p5), %s399_s14, 4294967168  ;;  %p20_p10 = scmp.ge.s32.totalorder %s771_s8, 4   ;;  %s973_s21 = smov %s673_s22 }
 0x27d   : > { %s974_s22 = smov %s677_s23  ;;  %s975_s23 = smov %s807_s10 }
 0x27e   : > { %s976_s24 = smov %s771_s8  ;;  %22 = sbr.rel (!%p20_p10) target bundleno = 6 (0x6), region = 93 }
 0x285   :  { %404 = vsyncpa [#allocation3], 1 }
 0x286   :  { %406 = vsyncpa [#allocation3 + $0x1], 1 }
 0x287   :  { %407 = vsyncpa [#allocation6], 1 }
 0x288   :  { %408 = vsyncpa [#allocation4], 1 }
 0x289   :  { %410 = vsyncpa [#allocation4 + $0x1], 1 }

</bundles_post_ra>
